<compile_context>
chip_gen: v6e
topology: v6e:2x2x1
jax: 0.10.0
libtpu: 0.0.40
codegen_flags: <defaults>
</compile_context>

<pallas_src>
import jax
import jax.numpy as jnp
from jax.experimental import pallas as pl
from jax.experimental.pallas import tpu as pltpu


# ----------------------------------------------------------------------------
# Fast path: NoEncoder is an identity — return the input, launch nothing.
# ----------------------------------------------------------------------------
def no_encoder_forward(batch_text: jax.Array) -> jax.Array:
    return batch_text


# ----------------------------------------------------------------------------
# Parity kernel 1: direct HBM -> HBM DMA (no VMEM staging).
# ----------------------------------------------------------------------------
def _dma_copy_kernel(x_hbm_ref, o_hbm_ref, sem):
    cp = pltpu.make_async_copy(x_hbm_ref, o_hbm_ref, sem)
    cp.start()
    cp.wait()


def no_encoder_forward_pallas_dma(batch_text: jax.Array) -> jax.Array:
    if batch_text.size == 0:
        return batch_text
    itemsize = jnp.dtype(batch_text.dtype).itemsize
    return pl.pallas_call(
        _dma_copy_kernel,
        out_shape=jax.ShapeDtypeStruct(batch_text.shape, batch_text.dtype),
        in_specs=[pl.BlockSpec(memory_space=pl.ANY)],
        out_specs=pl.BlockSpec(memory_space=pl.ANY),
        scratch_shapes=[pltpu.SemaphoreType.DMA],
        cost_estimate=pl.CostEstimate(
            flops=0,
            transcendentals=0,
            bytes_accessed=2 * batch_text.size * itemsize,
        ),
    )(batch_text)


# ----------------------------------------------------------------------------
# Parity kernel 2: byte-capped, lane-dense, BlockSpec-tiled VMEM copy.
# ----------------------------------------------------------------------------
def _vmem_copy_kernel(x_ref, o_ref):
    # Exact pass-through of one (tile_rows, lane) slab.
    o_ref[...] = x_ref[...]


def _sublane_multiple(dtype) -> int:
    # Sub-32-bit dtypes pack along sublanes: 8 rows for 4-byte elements,
    # 16 for 2-byte (bf16/f16), 32 for 1-byte (int8/fp8).
    return max(8, 32 // jnp.dtype(dtype).itemsize)


def _choose_layout(total: int, dtype):
    """Return (rows, lane, tile_rows, grid_steps) for a lane-dense copy, or None."""
    if total == 0 or total % 128 != 0:
        return None
    itemsize = jnp.dtype(dtype).itemsize
    sub = _sublane_multiple(dtype)

    # Lane-dense last dim (multiple of 128); modest widths keep the byte cap
    # easy to honour (512 lanes x 512 rows x 4 B = 1 MiB).
    lane = 128
    for cand in (512, 256):
        if total % cand == 0:
            lane = cand
            break
    rows = total // lane

    # Cap the block by BYTES (~1 MiB).  Double-buffered input + output blocks
    # => ~4 MiB of VMEM, well under v5e's 16 MiB default scoped VMEM and
    # v7x's 64 MiB physical.
    target_block_bytes = 1 << 20
    tile_rows = min(rows, max(sub, target_block_bytes // (lane * itemsize)))
    tile_rows -= tile_rows % sub
    if tile_rows <= 0:
        # Tiny array (rows < sublane multiple): a single full-extent block is
        # always a legal block shape.
        tile_rows = rows

    grid_steps = pl.cdiv(rows, tile_rows)  # partial last block handled by Pallas
    return rows, lane, tile_rows, grid_steps


def no_encoder_forward_pallas_tiled(batch_text: jax.Array) -> jax.Array:
    layout = _choose_layout(batch_text.size, batch_text.dtype)
    if layout is None:
        # Can't form a lane-dense layout without padding: still launch a real
        # kernel via the shape-agnostic DMA path.
        return no_encoder_forward_pallas_dma(batch_text)

    rows, lane, tile_rows, grid_steps = layout
    itemsize = jnp.dtype(batch_text.dtype).itemsize
    x2 = batch_text.reshape(rows, lane)

    y2 = pl.pallas_call(
        _vmem_copy_kernel,
        out_shape=jax.ShapeDtypeStruct((rows, lane), batch_text.dtype),
        grid=(grid_steps,),
        in_specs=[pl.BlockSpec((tile_rows, lane), lambda i: (i, 0))],
        out_specs=pl.BlockSpec((tile_rows, lane), lambda i: (i, 0)),
        input_output_aliases={0: 0},
        cost_estimate=pl.CostEstimate(
            flops=0,
            transcendentals=0,
            bytes_accessed=2 * batch_text.size * itemsize,
        ),
        compiler_params=pltpu.CompilerParams(
            dimension_semantics=("parallel",),
        ),
    )(x2)
    return y2.reshape(batch_text.shape)


# ----------------------------------------------------------------------------
# Module wrapper
# ----------------------------------------------------------------------------
class NoEncoder:
    """JAX/Pallas mirror of the PyTorch NoEncoder module (no parameters)."""

    def __init__(self, model_name: str = "", *args, **kwargs) -> None:
        self.model_name = model_name

    def __call__(self, batch_text: jax.Array, copy_mode=None) -> jax.Array:
        # copy_mode=None   -> zero-cost identity (exactly the PyTorch forward).
        # copy_mode="dma"  -> direct HBM->HBM DMA copy (no VMEM staging).
        # copy_mode="vmem" -> BlockSpec-tiled VMEM copy (byte-capped blocks).
        if copy_mode == "dma":
            return no_encoder_forward_pallas_dma(batch_text)
        if copy_mode == "vmem":
            return no_encoder_forward_pallas_tiled(batch_text)
        return no_encoder_forward(batch_text)


if __name__ == "__main__":
    key = jax.random.PRNGKey(0)
    # Small "batch of text features": batch=2, seq=8, hidden=128.
    x = jax.random.normal(key, (2, 8, 128), dtype=jnp.float32)

    enc = NoEncoder(model_name="")

    # Production path: zero-cost identity, matching the PyTorch forward.
    y_fast = jax.block_until_ready(enc(x))
    assert y_fast.shape == x.shape and y_fast.dtype == x.dtype
    assert bool(jnp.all(y_fast == x))

    # Parity path 1: direct HBM->HBM DMA copy.
    y_dma = jax.block_until_ready(enc(x, copy_mode="dma"))
    assert y_dma.shape == x.shape and y_dma.dtype == x.dtype
    assert bool(jnp.all(y_dma == x))

    # Parity path 2: byte-capped BlockSpec-tiled VMEM copy.
    y_vmem = jax.block_until_ready(enc(x, copy_mode="vmem"))
    assert y_vmem.shape == x.shape and y_vmem.dtype == x.dtype
    assert bool(jnp.all(y_vmem == x))

    print("KERNEL_OK")
</pallas_src>

<mosaic_0001>
module attributes {stable_mosaic.version = 11 : i64} {
  func.func @_dma_copy_kernel(%arg0: memref<2x8x128xf32, #tpu.memory_space<any>>, %arg1: memref<2x8x128xf32, #tpu.memory_space<any>>, %arg2: memref<!tpu.dma_semaphore, #tpu.memory_space<semaphore_mem>>) attributes {dimension_semantics = [], scalar_prefetch = 0 : i64, scratch_operands = 1 : i64, tpu.core_type = #tpu.core_type<tc>} {
    tpu.enqueue_dma source(%arg0 : memref<2x8x128xf32, #tpu.memory_space<any>>) target(%arg1 : memref<2x8x128xf32, #tpu.memory_space<any>>) target_semaphore(%arg2 : memref<!tpu.dma_semaphore, #tpu.memory_space<semaphore_mem>>)
    tpu.wait_dma2 semaphore(%arg2 : memref<!tpu.dma_semaphore, #tpu.memory_space<semaphore_mem>>) src(%arg0 : memref<2x8x128xf32, #tpu.memory_space<any>>) dst(%arg1 : memref<2x8x128xf32, #tpu.memory_space<any>>)
    return
  }
}

</mosaic_0001>

<bundles_post_ra>
// kernel: tpu_custom_call.1
= control target key start
LH: loop header
LB: loop body
LE: loop exit
PB: predicated region body
PF: predicated region fallthrough
CT: control target
= control target key end

     0   :  { %s29_s6 = smov [#allocation2]   ;;  %s30_s7 = smov 131072   ;;  %s48_s0 = inlined_call_operand.hbm [shape: f32[2,8,128], index: 0, kind: input, shape index: {}]   ;;  %s49_s1 = inlined_call_operand.hbm [shape: f32[2,8,128], index: 1, kind: output, shape index: {}]  }
   0x1   :  { %s31_s8 = smov 0  }
   0x2   :  { %12 = dma.general %s48_s0, 256, %s49_s1, %s29_s6, %s30_s7, [#allocation4], %s31_s8, 0  }
   0x3   :  { %27 = dma.done.wait [#allocation2], 256 }
   0x4   :  { %28 = vsyncadd [#allocation2], 4294967040 }
   0x5   :  { %17 = vsyncmov [#allocation2] }
   0x8   :  { %s18_s13 = vpop.sfrf %17 }
   0x9   :  { %p23_p0 = scmp.ne.s32.totalorder %s18_s13, 0 }
   0xb   :  { %22 = shalt.err (%p23_p0)  }

</bundles_post_ra>
